<compile_context>
chip_gen: v5e
topology: v5e:2x2
jax: 0.10.0
libtpu: 0.0.40
codegen_flags: <defaults>
</compile_context>

<pallas_src>
import functools

import jax
import jax.numpy as jnp
from jax import lax
from jax.experimental import pallas as pl
from jax.experimental.pallas import tpu as pltpu

ALPHA = 0.25          # torchvision defaults: alpha=0.25
# GAMMA == 2.0 is implemented as q * q (no float-exponent pow on the EUP).
LANES = 128


def _device_kind():
    try:
        return jax.devices()[0].device_kind.lower()
    except Exception:
        return ""


def _focal_loss_kernel(x_ref, t_ref, o_ref, *, rows, block_rows,
                       blocks_per_split, needs_mask):
    c = pl.program_id(0)   # split axis (CORE_PARALLEL on v7x)
    i = pl.program_id(1)   # reduction over row-blocks

    @pl.when(i == 0)
    def _():
        o_ref[...] = jnp.zeros_like(o_ref)

    x = x_ref[...].astype(jnp.float32)
    t = t_ref[...].astype(jnp.float32)

    # One shared exp for both sigmoid(x) and the stable BCE-with-logits.
    e = jnp.exp(-jnp.abs(x))
    inv = 1.0 / (1.0 + e)                              # exact divide (see header)
    p = jnp.where(x >= 0.0, inv, e * inv)              # sigmoid(x)
    ce = jnp.maximum(x, 0.0) - x * t + jnp.log1p(e)    # BCE with logits

    q = p + t - 2.0 * p * t                            # = 1 - p_t
    alpha_t = (1.0 - ALPHA) - (1.0 - 2.0 * ALPHA) * t  # = 0.75 - 0.5 * t
    loss = alpha_t * ce * (q * q)

    if needs_mask:
        # Scalar remaining-row count for this *nominal* block: zeroes the row
        # overhang of the last real block and any duplicated (clamped) block
        # of the second split (remaining <= 0).  jnp.where (not multiply) so
        # garbage in the overhang can never propagate NaN/Inf into the sum.
        blk = c * blocks_per_split + i
        remaining = rows - blk * block_rows
        row_ids = lax.broadcasted_iota(jnp.int32, (block_rows, LANES), 0)
        loss = jnp.where(row_ids < remaining, loss, 0.0)

    # Per-lane partial sums accumulated into the resident output block.
    o_ref[...] += jnp.sum(loss, axis=0, keepdims=True)[None]


def _focal_sum_plain(x, t):
    """Plain-JAX focal-loss *sum* (only used for a <=127-element tail)."""
    x = x.astype(jnp.float32)
    t = t.astype(jnp.float32)
    p = jax.nn.sigmoid(x)
    ce = jnp.maximum(x, 0.0) - x * t + jnp.log1p(jnp.exp(-jnp.abs(x)))
    q = p + t - 2.0 * p * t
    alpha_t = (1.0 - ALPHA) - (1.0 - 2.0 * ALPHA) * t
    return jnp.sum(alpha_t * ce * q * q)


def focal_loss(inputs, targets):
    """sigmoid_focal_loss(inputs, targets, alpha=0.25, gamma=2, reduction='mean')."""
    n = int(inputs.size)

    kind = _device_kind()
    is_v7 = ("v7" in kind) or ("tpu7" in kind)
    big_vmem = is_v7 or ("v6" in kind)
    # 8192x128 f32 = 4 MiB/input/buffer (16 MiB double-buffered) on v6e/v7x;
    # 4096 (8 MiB total) stays under v5e's 16 MiB default scoped VMEM.
    max_block_rows = 8192 if big_vmem else 4096

    xf = inputs.reshape(-1)
    tf = targets.reshape(-1)
    rows = n // LANES
    rem = n - rows * LANES

    tail_sum = jnp.float32(0.0)
    if rem:
        # <=127 trailing elements handled in plain JAX (no full-array pad).
        tail_sum = _focal_sum_plain(xf[rows * LANES:], tf[rows * LANES:])
    if rows == 0:
        return tail_sum / jnp.float32(n)

    if rem:
        xf = xf[: rows * LANES]
        tf = tf[: rows * LANES]
    x2 = xf.reshape(rows, LANES)   # free view for contiguous inputs when rem == 0
    t2 = tf.reshape(rows, LANES)

    if rows <= max_block_rows:
        block_rows = rows          # single block == full dim (always legal)
        total_blocks = 1
    else:
        block_rows = max_block_rows
        total_blocks = pl.cdiv(rows, block_rows)

    # 2-way split only where it can actually shard across TensorCores (v7x).
    nsplit = 2 if (is_v7 and total_blocks >= 2) else 1
    blocks_per_split = pl.cdiv(total_blocks, nsplit)
    needs_mask = (rows % block_rows != 0) or (nsplit * blocks_per_split != total_blocks)

    def in_map(c, i):
        # Clamp so the (possibly shorter) last split never DMAs past the
        # array; the in-kernel mask zeroes any duplicated block.
        return (jnp.minimum(c * blocks_per_split + i, total_blocks - 1), 0)

    arb = getattr(pltpu, "ARBITRARY", "arbitrary")
    if nsplit > 1:
        # Plain "parallel" does not shard across TCs; CORE_PARALLEL does.
        split_sem = getattr(pltpu, "CORE_PARALLEL", "parallel")
    else:
        split_sem = arb

    kernel = functools.partial(
        _focal_loss_kernel, rows=rows, block_rows=block_rows,
        blocks_per_split=blocks_per_split, needs_mask=needs_mask)

    partial_sums = pl.pallas_call(
        kernel,
        out_shape=jax.ShapeDtypeStruct((nsplit, 1, LANES), jnp.float32),
        grid_spec=pltpu.PrefetchScalarGridSpec(
            num_scalar_prefetch=0,
            grid=(nsplit, blocks_per_split),
            in_specs=[
                pl.BlockSpec((block_rows, LANES), in_map),
                pl.BlockSpec((block_rows, LANES), in_map),
            ],
            out_specs=pl.BlockSpec((1, 1, LANES), lambda c, i: (c, 0, 0)),
        ),
        compiler_params=pltpu.CompilerParams(
            dimension_semantics=(split_sem, arb),
        ),
    )(x2, t2)

    return (jnp.sum(partial_sums) + tail_sum) / jnp.float32(n)


def _focal_loss_ref(inputs, targets):
    x = inputs.astype(jnp.float32)
    t = targets.astype(jnp.float32)
    p = jax.nn.sigmoid(x)
    ce = jnp.maximum(x, 0.0) - x * t + jnp.log1p(jnp.exp(-jnp.abs(x)))
    p_t = p * t + (1.0 - p) * (1.0 - t)
    loss = ce * (1.0 - p_t) ** 2.0
    alpha_t = ALPHA * t + (1.0 - ALPHA) * (1.0 - t)
    return jnp.mean(alpha_t * loss)


if __name__ == "__main__":
    key = jax.random.PRNGKey(0)
    k1, k2 = jax.random.split(key)
    # Shapes consistent with a dense-prediction logit map: NCHW
    x = jax.random.normal(k1, (2, 4, 16, 16), dtype=jnp.float32)
    tgt = jax.random.bernoulli(k2, p=0.3, shape=(2, 4, 16, 16)).astype(jnp.float32)

    out = jax.block_until_ready(focal_loss(x, tgt))
    ref = jax.block_until_ready(_focal_loss_ref(x, tgt))

    assert jnp.allclose(out, ref, atol=1e-6, rtol=1e-5), (out, ref)
    print("KERNEL_OK")
</pallas_src>

<mosaic_0001>
module attributes {stable_mosaic.version = 11 : i64} {
  func.func @_focal_loss_kernel(%arg0: i32, %arg1: i32, %arg2: memref<16x128xf32, #tpu.memory_space<vmem>>, %arg3: memref<16x128xf32, #tpu.memory_space<vmem>>, %arg4: memref<1x1x128xf32, #tpu.memory_space<vmem>>) attributes {dimension_semantics = [#tpu.dimension_semantics<arbitrary>, #tpu.dimension_semantics<arbitrary>], iteration_bounds = array<i64: 1, 1>, scalar_prefetch = 0 : i64, scratch_operands = 0 : i64, tpu.core_type = #tpu.core_type<tc>, window_params = [{transform_indices = @transform_0, window_bounds = array<i64: 16, 128>}, {transform_indices = @transform_1, window_bounds = array<i64: 16, 128>}, {transform_indices = @transform_2, window_bounds = array<i64: 1, 1, 128>}]} {
    %c0_i32 = arith.constant 0 : i32
    %0 = arith.cmpi eq, %arg1, %c0_i32 : i32
    %1 = arith.extui %0 : i1 to i32
    %c0_i32_0 = arith.constant 0 : i32
    %2 = arith.cmpi ne, %1, %c0_i32_0 : i32
    scf.if %2 {
      %cst_18 = arith.constant 0.000000e+00 : f32
      %41 = vector.broadcast %cst_18 : f32 to vector<1x1x128xf32>
      %c0_19 = arith.constant 0 : index
      %c0_20 = arith.constant 0 : index
      %c0_21 = arith.constant 0 : index
      %42 = vector.load %arg4[%c0_19, %c0_20, %c0_21] : memref<1x1x128xf32, #tpu.memory_space<vmem>>, vector<1x1x128xf32>
      tpu.vector_store %arg4[%c0_19, %c0_20, %c0_21], %41 {strides = array<i32>} : memref<1x1x128xf32, #tpu.memory_space<vmem>>, vector<1x1x128xf32>,
    } else {
    }
    %c0 = arith.constant 0 : index
    %c0_1 = arith.constant 0 : index
    %3 = vector.load %arg2[%c0, %c0_1] : memref<16x128xf32, #tpu.memory_space<vmem>>, vector<16x128xf32>
    %c0_2 = arith.constant 0 : index
    %c0_3 = arith.constant 0 : index
    %4 = vector.load %arg3[%c0_2, %c0_3] : memref<16x128xf32, #tpu.memory_space<vmem>>, vector<16x128xf32>
    %5 = math.absf %3 : vector<16x128xf32>
    %cst = arith.constant 0.000000e+00 : f32
    %6 = vector.broadcast %cst : f32 to vector<16x128xf32>
    %7 = arith.subf %6, %5 : vector<16x128xf32>
    %8 = math.exp %7 : vector<16x128xf32>
    %cst_4 = arith.constant 1.000000e+00 : f32
    %9 = vector.broadcast %cst_4 : f32 to vector<16x128xf32>
    %10 = arith.addf %9, %8 : vector<16x128xf32>
    %cst_5 = arith.constant 1.000000e+00 : f32
    %11 = vector.broadcast %cst_5 : f32 to vector<16x128xf32>
    %12 = arith.divf %11, %10 : vector<16x128xf32>
    %cst_6 = arith.constant 0.000000e+00 : f32
    %13 = vector.broadcast %cst_6 : f32 to vector<16x128xf32>
    %14 = arith.cmpf oge, %3, %13 : vector<16x128xf32>
    %15 = arith.mulf %8, %12 : vector<16x128xf32>
    %16 = arith.select %14, %12, %15 : vector<16x128xi1>, vector<16x128xf32>
    %cst_7 = arith.constant 0.000000e+00 : f32
    %17 = vector.broadcast %cst_7 : f32 to vector<16x128xf32>
    %18 = arith.maximumf %3, %17 : vector<16x128xf32>
    %19 = arith.mulf %3, %4 : vector<16x128xf32>
    %20 = arith.subf %18, %19 : vector<16x128xf32>
    %21 = math.log1p %8 : vector<16x128xf32>
    %22 = arith.addf %20, %21 : vector<16x128xf32>
    %23 = arith.addf %16, %4 : vector<16x128xf32>
    %cst_8 = arith.constant 2.000000e+00 : f32
    %24 = vector.broadcast %cst_8 : f32 to vector<16x128xf32>
    %25 = arith.mulf %24, %16 : vector<16x128xf32>
    %26 = arith.mulf %25, %4 : vector<16x128xf32>
    %27 = arith.subf %23, %26 : vector<16x128xf32>
    %cst_9 = arith.constant 5.000000e-01 : f32
    %28 = vector.broadcast %cst_9 : f32 to vector<16x128xf32>
    %29 = arith.mulf %28, %4 : vector<16x128xf32>
    %cst_10 = arith.constant 7.500000e-01 : f32
    %30 = vector.broadcast %cst_10 : f32 to vector<16x128xf32>
    %31 = arith.subf %30, %29 : vector<16x128xf32>
    %32 = arith.mulf %31, %22 : vector<16x128xf32>
    %33 = arith.mulf %27, %27 : vector<16x128xf32>
    %34 = arith.mulf %32, %33 : vector<16x128xf32>
    %c0_11 = arith.constant 0 : index
    %c0_12 = arith.constant 0 : index
    %c0_13 = arith.constant 0 : index
    %35 = vector.load %arg4[%c0_11, %c0_12, %c0_13] : memref<1x1x128xf32, #tpu.memory_space<vmem>>, vector<1x1x128xf32>
    %cst_14 = arith.constant dense<0.000000e+00> : vector<128xf32>
    %36 = vector.multi_reduction <add>, %34, %cst_14 [0] : vector<16x128xf32> to vector<128xf32>
    %37 = vector.shape_cast %36 : vector<128xf32> to vector<1x128xf32>
    %38 = vector.shape_cast %37 : vector<1x128xf32> to vector<1x1x128xf32>
    %39 = arith.addf %35, %38 : vector<1x1x128xf32>
    %c0_15 = arith.constant 0 : index
    %c0_16 = arith.constant 0 : index
    %c0_17 = arith.constant 0 : index
    %40 = vector.load %arg4[%c0_15, %c0_16, %c0_17] : memref<1x1x128xf32, #tpu.memory_space<vmem>>, vector<1x1x128xf32>
    tpu.vector_store %arg4[%c0_15, %c0_16, %c0_17], %39 {strides = array<i32>} : memref<1x1x128xf32, #tpu.memory_space<vmem>>, vector<1x1x128xf32>,
    return
  }
  func.func @transform_0(%arg0: i32, %arg1: i32) -> (i32, i32) {
    %c1_i32 = arith.constant 1 : i32
    %0 = arith.muli %arg0, %c1_i32 : i32
    %1 = arith.addi %0, %arg1 : i32
    %c0_i32 = arith.constant 0 : i32
    %2 = arith.minsi %1, %c0_i32 : i32
    %c0_i32_0 = arith.constant 0 : i32
    %c0_i32_1 = arith.constant 0 : i32
    return %2, %c0_i32_0 : i32, i32
  }
  func.func @transform_1(%arg0: i32, %arg1: i32) -> (i32, i32) {
    %c1_i32 = arith.constant 1 : i32
    %0 = arith.muli %arg0, %c1_i32 : i32
    %1 = arith.addi %0, %arg1 : i32
    %c0_i32 = arith.constant 0 : i32
    %2 = arith.minsi %1, %c0_i32 : i32
    %c0_i32_0 = arith.constant 0 : i32
    %c0_i32_1 = arith.constant 0 : i32
    return %2, %c0_i32_0 : i32, i32
  }
  func.func @transform_2(%arg0: i32, %arg1: i32) -> (i32, i32, i32) {
    %c0_i32 = arith.constant 0 : i32
    %c0_i32_0 = arith.constant 0 : i32
    %c0_i32_1 = arith.constant 0 : i32
    return %arg0, %c0_i32, %c0_i32_0 : i32, i32, i32
  }
}

</mosaic_0001>

<bundles_post_ra>
// kernel: tpu_custom_call.1
= control target key start
LH: loop header
LB: loop body
LE: loop exit
PB: predicated region body
PF: predicated region fallthrough
CT: control target
= control target key end

     0   :  { %7 = vsyncpa [#allocation3], 0  ;;  %s385_s0 = inlined_call_operand.hbm [shape: f32[16,128], index: 0, kind: input, shape index: {}]   ;;  %s386_s1 = inlined_call_operand.hbm [shape: f32[16,128], index: 1, kind: input, shape index: {}]   ;;  %s387_s2 = inlined_call_operand.hbm [shape: f32[1,1,128], index: 2, kind: output, shape index: {}]  }
   0x1   :  { %8 = vsyncpa [#allocation6], 0 }
   0x2   :  { %9 = vsyncpa [#allocation4], 0  ;;  %s20_s11 = sshll.u32 %s385_s0, 4  ;;  %s291_s12 = smov [#allocation2]   ;;  %s21_s11 = int_to_ptr.hbm [resolvable:$true] %s20_s11 }
   0x3   :  { %s22_s13 = sshll.u32 %s291_s12, 4  ;;  %s39_s16 = sshll.u32 %s386_s1, 4  ;;  %s23_s13 = int_to_ptr.vmem [resolvable:$true] %s22_s13  ;;  %s40_s16 = int_to_ptr.hbm [resolvable:$true] %s39_s16 }
   0x4   :  { %s292_s17 = smov 128   ;;  %s293_s18 = smov 8  }
   0x5   :  { %28 = dma.hbm_to_vmem [thread:$0]  %s21_s11, 256, %s23_s13, [#allocation3], %s292_s17, %s292_s17, %s293_s18  }
   0x6   :  { %s294_s19 = smov [#allocation5]  }
   0x7   :  { %s41_s20 = sshll.u32 %s294_s19, 4  ;;  %s42_s20 = int_to_ptr.vmem [resolvable:$true] %s41_s20 }
   0x8   :  { %47 = dma.hbm_to_vmem [thread:$0]  %s40_s16, 256, %s42_s20, [#allocation6], %s292_s17, %s292_s17, %s293_s18  }
   0x9   :  { %285 = dma.done.wait [#allocation3], 256  }
   0xa   :  { %286 = vsyncadd [#allocation3], 4294967040 }
   0xb   :  { %287 = dma.done.wait [#allocation6], 256  }
   0xc   :  { %288 = vsyncadd [#allocation6], 4294967040  ;;  %v295_v0 = vmov 0.0   ;;  %v318_v1 = vld [vmem:[#allocation2] sm:$0xff]  ;;  %v320_v2 = vld [vmem:[#allocation2 + $0x8] sm:$0xff]  ;;  %s296_s0 = smov [#allocation7]  }
   0xd   :  { %68 = vst [vmem:[#allocation7] sm:$0x1] %v295_v0  ;;  %v73_v3 = vand.u32 2147483647, %v318_v1  ;;  %v74_v4 = vand.u32 2147483647, %v320_v2 }
   0xe   :  { %v119_v15 = vmax.f32 %v318_v1, 0.0  ;;  %v329_v18 = vld [vmem:[#allocation5] sm:$0xff]  ;;  %v120_v20 = vmax.f32 %v320_v2, 0.0  ;;  %v72_v22 = vld [vmem:[#allocation5 + $0x8] sm:$0xff]  ;;  %vm113_vm1 = vcmp.ge.f32.partialorder %v318_v1, 0.0  ;;  %vm114_vm10 = vcmp.ge.f32.partialorder %v320_v2, 0.0 }
   0xf   :  { %v75_v5 = vsub.f32 0.0, %v73_v3  ;;  %v76_v6 = vsub.f32 0.0, %v74_v4  ;;  %v121_v35 = vmul.f32 %v329_v18, %v318_v1  ;;  %v122_v36 = vmul.f32 %v72_v22, %v320_v2  ;;  %s178_s1 = sshll.u32 %s296_s0, 4  ;;  %s180_s23 = sshll.u32 %s387_s2, 4  ;;  %s179_s1 = int_to_ptr.vmem [resolvable:$true] %s178_s1  ;;  %s181_s23 = int_to_ptr.hbm [resolvable:$true] %s180_s23 }
  0x10   :  { %v153_v54 = vmul.f32 0.5, %v329_v18  ;;  %v154_v62 = vmul.f32 0.5, %v72_v22 }
  0x11   :  { %v77_v7 = vmul.f32 1.442695, %v75_v5  ;;  %v79_v8 = vmul.f32 1.442695, %v76_v6  ;;  %v123_v57 = vsub.f32 %v119_v15, %v121_v35  ;;  %v124_v58 = vsub.f32 %v120_v20, %v122_v36 }
  0x12   :  { %v155_v3 = vsub.f32 0.75, %v153_v54 }
  0x13   :  { %201 = vpow2.f32 %v77_v7 }
  0x14   :  { %203 = vpow2.f32 %v79_v8 }
  0x19   :  { %v202_v9 = vpop.eup %201 }
  0x1a   :  { %v324_v10 = vpop.eup %203  ;;  %v81_v11 = vadd.f32 1.0, %v202_v9  ;;  %v128_v13 = vmul.f32 -0.5, %v202_v9  ;;  %v131_v21 = vand.u32 2147483647, %v202_v9 }
  0x1b   :  { %v82_v12 = vadd.f32 1.0, %v324_v10  ;;  %v137_v16 = vmul.f32 -0.5, %v324_v10  ;;  %v140_v37 = vand.u32 2147483647, %v324_v10 }
  0x1c   :  { %205 = vrcp.f32 %v81_v11  ;;  %vm88_vm0 = vweird.f32 %v81_v11  ;;  %v92_v23 = vand.u32 2147483647, %v81_v11  ;;  %v94_v24 = vand.u32 2147483648, %v81_v11 }
  0x1d   :  { %207 = vrcp.f32 %v82_v12  ;;  %v107_v26 = vand.u32 2147483647, %v82_v12  ;;  %v109_v28 = vand.u32 2147483648, %v82_v12  ;;  %v129_v29 = vadd.f32 1.0, %v128_v13 }
  0x1e   :  { %209 = vlog2.f32 %v81_v11  ;;  %vm103_vm3 = vweird.f32 %v82_v12  ;;  %v138_v32 = vadd.f32 1.0, %v137_v16  ;;  %vm342_vm6 = vcmp.eq.f32.partialorder %v92_v23, 8.507059e+37 }
  0x1f   :  { %211 = vlog2.f32 %v82_v12  ;;  %v95_v40 = vor.u32 1.1754944e-38, %v94_v24  ;;  %vm346_vm7 = vcmp.eq.f32.partialorder %v107_v26, 8.507059e+37  ;;  %v110_v45 = vor.u32 1.1754944e-38, %v109_v28 }
  0x20   :  { %v130_v47 = vmul.f32 %v202_v9, %v129_v29  ;;  %vm354_vm9 = vcmp.lt.f32.partialorder %v131_v21, 0.0004427343  ;;  %v139_v51 = vmul.f32 %v324_v10, %v138_v32  ;;  %vm362_vm11 = vcmp.lt.f32.partialorder %v140_v37, 0.0004427343  ;;  %v163_v29 = vld [vmem:[#allocation7] sm:$0x1] }
  0x22   :  { %v206_v14 = vpop.eup %205 }
  0x23   :  { %v208_v17 = vpop.eup %207  ;;  %v84_v19 = vmul.f32 %v206_v14, %v81_v11  ;;  %vm89_vm2 = vweird.f32 %v206_v14 }
  0x24   :  { %v99_v25 = vmul.f32 %v208_v17, %v82_v12  ;;  %v210_v30 = vpop.eup %209  ;;  %vm104_vm4 = vweird.f32 %v208_v17  ;;  %vm338_vm5 = vmor %vm88_vm0, %vm89_vm2  ;;  %v156_v12 = vsub.f32 0.75, %v154_v62 }
  0x25   :  { %v85_v27 = vsub.f32 1.0, %v84_v19  ;;  %v212_v33 = vpop.eup %211  ;;  %vm350_vm8 = vmor %vm103_vm3, %vm104_vm4  ;;  %v127_v46 = vmul.f32 0.6931472, %v210_v30 }
  0x26   :  { %v100_v31 = vsub.f32 1.0, %v99_v25  ;;  %v136_v50 = vmul.f32 0.6931472, %v212_v33 }
  0x27   :  { %v86_v34 = vmul.f32 %v206_v14, %v85_v27  ;;  %v133_v61 = vsel %vm354_vm9, %v130_v47, %v127_v46 }
  0x28   :  { %v101_v41 = vmul.f32 %v208_v17, %v100_v31  ;;  %v142_v0 = vsel %vm362_vm11, %v139_v51, %v136_v50  ;;  %v143_v5 = vadd.f32 %v133_v61, %v123_v57 }
  0x29   :  { %v87_v43 = vadd.f32 %v206_v14, %v86_v34  ;;  %v144_v8 = vadd.f32 %v142_v0, %v124_v58 }
  0x2a   :  { %v102_v48 = vadd.f32 %v208_v17, %v101_v41  ;;  %v157_v15 = vmul.f32 %v155_v3, %v143_v5 }
  0x2b   :  { %v91_v52 = vsel %vm338_vm5, %v206_v14, %v87_v43 }
  0x2c   :  { %v96_v55 = vsel %vm342_vm6, %v95_v40, %v91_v52  ;;  %v106_v56 = vsel %vm350_vm8, %v208_v17, %v102_v48  ;;  %v158_v17 = vmul.f32 %v156_v12, %v144_v8 }
  0x2d   :  { %v111_v59 = vsel %vm346_vm7, %v110_v45, %v106_v56  ;;  %v115_v60 = vmul.f32 %v202_v9, %v96_v55 }
  0x2e   :  { %v116_v63 = vmul.f32 %v324_v10, %v111_v59 }
  0x2f   :  { %v117_v2 = vsel %vm113_vm1, %v96_v55, %v115_v60 }
  0x30   :  { %v118_v4 = vsel %vm114_vm10, %v111_v59, %v116_v63  ;;  %v145_v6 = vadd.f32 %v117_v2, %v329_v18  ;;  %v147_v7 = vmul.f32 2.0, %v117_v2 }
  0x31   :  { %v146_v9 = vadd.f32 %v118_v4, %v72_v22  ;;  %v148_v11 = vmul.f32 2.0, %v118_v4 }
  0x32   :  { %v149_v13 = vmul.f32 %v147_v7, %v329_v18 }
  0x33   :  { %v150_v14 = vmul.f32 %v148_v11, %v72_v22 }
  0x34   :  { %v151_v10 = vsub.f32 %v145_v6, %v149_v13 }
  0x35   :  { %v152_v16 = vsub.f32 %v146_v9, %v150_v14 }
  0x36   :  { %v159_v19 = vmul.f32 %v151_v10, %v151_v10 }
  0x37   :  { %v160_v1 = vmul.f32 %v152_v16, %v152_v16 }
  0x38   :  { %v161_v20 = vmul.f32 %v159_v19, %v157_v15 }
  0x39   :  { %v162_v21 = vmul.f32 %v160_v1, %v158_v17 }
  0x3b   :  { %v164_v23 = vadd.f32 %v162_v21, %v161_v20 }
  0x3d   :  { %v165_v24 = vrot.slane %v164_v23, 4 }
  0x3f   :  { %v166_v25 = vadd.f32 %v165_v24, %v164_v23 }
  0x41   :  { %v167_v26 = vrot.slane %v166_v25, 2 }
  0x43   :  { %v168_v27 = vadd.f32 %v167_v26, %v166_v25 }
  0x45   :  { %v169_v28 = vrot.slane %v168_v27, 1 }
  0x47   :  { %v170_v18 = vadd.f32 %v169_v28, %v168_v27 }
  0x49   :  { %v171_v22 = vadd.f32 %v170_v18, %v163_v29 }
  0x4b   :  { %172 = vst [vmem:[#allocation7] sm:$0x1] %v171_v22 }
  0x4c   :  { %183 = dma.vmem_to_hbm [thread:$0]  %s179_s1, 16, %s181_s23, [#allocation4]  }
  0x4d   :  { %289 = dma.done.wait [#allocation4], 16  }
  0x4e   :  { %290 = vsyncadd [#allocation4], 4294967280 }
  0x4f   :  { %188 = vsyncpa [#allocation3], 1 }
  0x50   :  { %189 = vsyncpa [#allocation6], 1 }
  0x51   :  { %190 = vsyncpa [#allocation4], 1 }

</bundles_post_ra>
